<compile_context>
chip_gen: v5e
topology: v5e:2x2
jax: 0.10.0
libtpu: 0.0.40
codegen_flags: <defaults>
</compile_context>

<pallas_src>
import jax
import jax.numpy as jnp
from jax.experimental import pallas as pl
from jax.experimental.pallas import tpu as pltpu

# Environment constants (CartPole-like DQN: env.observation_space.shape[0]=4,
# env.action_space.n=2).
N_STATES = 4
N_ACTIONS = 2
HIDDEN = 50

_HP = 128        # hidden dim padded to one lane width (50 -> 128), internal only
_W2_LANES = 128  # W2/b2 internal lane padding for the MXU; stored output stays N_ACTIONS wide


def net_kernel(x_ref, w1_ref, b1_ref, w2_ref, b2_ref, o_ref):
    # fc1: x @ W1 + b1, ReLU, then out: h @ W2 + b2.  Everything is VMEM-resident;
    # both matmuls run back-to-back on the MXU with f32 accumulation.  Weights may
    # be bf16 (MXU-native); bias add / ReLU / accumulation stay f32.  W2/b2 are
    # lane-padded to 128 internally; only the first N_ACTIONS lanes are stored so
    # the padded lanes never hit HBM.
    w1 = w1_ref[...]
    w2 = w2_ref[...]
    x = x_ref[...].astype(w1.dtype)
    h = jnp.dot(x, w1, preferred_element_type=jnp.float32) + b1_ref[...]
    h = jnp.maximum(h, 0.0)
    o = jnp.dot(h.astype(w2.dtype), w2, preferred_element_type=jnp.float32) + b2_ref[...]
    o_ref[...] = o[:, :N_ACTIONS]


def prepare_params(w1, b1, w2, b2, *, weights_dtype=jnp.bfloat16):
    """One-time preprocessing (hoisted off the per-call path).

    PyTorch Linear convention in: w1 (HIDDEN, N_STATES), b1 (HIDDEN,),
    w2 (N_ACTIONS, HIDDEN), b2 (N_ACTIONS,).
    Weights are transposed to (in, out).  The hidden dim and W2/b2 output lanes
    are zero-padded to 128 purely for MXU-friendly internal layout; the kernel
    output stays N_ACTIONS wide.  The K=4 contraction dim is left unpadded.
    """
    f32 = jnp.float32
    w1p = jnp.zeros((N_STATES, _HP), weights_dtype).at[:, :HIDDEN].set(
        w1.T.astype(weights_dtype))
    b1p = jnp.zeros((1, _HP), f32).at[0, :HIDDEN].set(b1.astype(f32))
    w2p = jnp.zeros((_HP, _W2_LANES), weights_dtype).at[:HIDDEN, :N_ACTIONS].set(
        w2.T.astype(weights_dtype))
    b2p = jnp.zeros((1, _W2_LANES), f32).at[0, :N_ACTIONS].set(b2.astype(f32))
    return w1p, b1p, w2p, b2p


@jax.jit
def net_forward(x, padded_params):
    """x: (B, N_STATES).  padded_params: output of prepare_params().
    Returns (B, N_ACTIONS) f32 action values."""
    w1p, b1p, w2p, b2p = padded_params
    B = x.shape[0]
    x = x.astype(jnp.float32)
    out_shape = jax.ShapeDtypeStruct((B, N_ACTIONS), jnp.float32)
    vmem_spec = pl.BlockSpec(memory_space=pltpu.MemorySpace.VMEM)

    if B < 1024:
        # Single whole-array VMEM block (full-array blocks are exempt from the
        # (8,128) rule): no batch pad, no output slicing, one dispatch.
        return pl.pallas_call(
            net_kernel,
            out_shape=out_shape,
            in_specs=[vmem_spec] * 5,
            out_specs=vmem_spec,
        )(x, w1p, b1p, w2p, b2p)

    # Large-batch path: 1-D grid over batch tiles with >= 2 blocks so both v7x
    # TensorCores run; weights stay resident across the grid.  Pallas handles a
    # ragged trailing batch block (rows are independent, OOB writes are masked).
    batch_block = max(512, min(2048, (B // 2) // 512 * 512))
    nb = pl.cdiv(B, batch_block)
    return pl.pallas_call(
        net_kernel,
        out_shape=out_shape,
        grid=(nb,),
        in_specs=[
            pl.BlockSpec((batch_block, N_STATES), lambda i: (i, 0)),
            pl.BlockSpec((N_STATES, _HP), lambda i: (0, 0)),
            pl.BlockSpec((1, _HP), lambda i: (0, 0)),
            pl.BlockSpec((_HP, _W2_LANES), lambda i: (0, 0)),
            pl.BlockSpec((1, _W2_LANES), lambda i: (0, 0)),
        ],
        out_specs=pl.BlockSpec((batch_block, N_ACTIONS), lambda i: (i, 0)),
        compiler_params=pltpu.CompilerParams(
            dimension_semantics=("parallel",)),  # engages both TCs on v7x
    )(x, w1p, b1p, w2p, b2p)


def init_params(key):
    """Deterministic synthetic init matching the module's shapes:
    fc1.weight ~ N(0, 0.1), out.weight ~ N(0, 0.1); biases use PyTorch's
    default uniform(-1/sqrt(fan_in), 1/sqrt(fan_in))."""
    k1, k2, k3, k4 = jax.random.split(key, 4)
    w1 = 0.1 * jax.random.normal(k1, (HIDDEN, N_STATES), dtype=jnp.float32)
    bound1 = 1.0 / jnp.sqrt(jnp.float32(N_STATES))
    b1 = jax.random.uniform(k2, (HIDDEN,), minval=-bound1, maxval=bound1,
                            dtype=jnp.float32)
    w2 = 0.1 * jax.random.normal(k3, (N_ACTIONS, HIDDEN), dtype=jnp.float32)
    bound2 = 1.0 / jnp.sqrt(jnp.float32(HIDDEN))
    b2 = jax.random.uniform(k4, (N_ACTIONS,), minval=-bound2, maxval=bound2,
                            dtype=jnp.float32)
    return w1, b1, w2, b2


if __name__ == "__main__":
    key = jax.random.PRNGKey(0)
    kx, kx2, kx3, kp = jax.random.split(key, 4)

    w1, b1, w2, b2 = init_params(kp)

    # One-time parameter preprocessing (hoisted out of the per-call path).
    params_bf16 = prepare_params(w1, b1, w2, b2)                          # default: bf16 MXU operands
    params_f32 = prepare_params(w1, b1, w2, b2, weights_dtype=jnp.float32)

    def torch_ref(xx):
        return jnp.maximum(xx @ w1.T + b1, 0.0) @ w2.T + b2

    # Small (single-block) path, bf16 weights (default).
    B = 2
    x = jax.random.normal(kx, (B, N_STATES), dtype=jnp.float32)
    actions_value = net_forward(x, params_bf16)
    jax.block_until_ready(actions_value)
    assert actions_value.shape == (B, N_ACTIONS)
    assert jnp.allclose(actions_value, torch_ref(x), atol=5e-2, rtol=5e-2)

    # Same path, f32 weights (exact parity with the PyTorch net).
    actions_value_f32 = net_forward(x, params_f32)
    jax.block_until_ready(actions_value_f32)
    assert jnp.allclose(actions_value_f32, torch_ref(x), atol=1e-5, rtol=1e-5)

    # Large-batch (gridded, batch-parallel, nb=2) path.
    B2 = 1024
    x2 = jax.random.normal(kx2, (B2, N_STATES), dtype=jnp.float32)
    actions_value2 = net_forward(x2, params_f32)
    jax.block_until_ready(actions_value2)
    assert actions_value2.shape == (B2, N_ACTIONS)
    assert jnp.allclose(actions_value2, torch_ref(x2), atol=1e-4, rtol=1e-4)

    # Gridded path with a ragged trailing batch block (B not a multiple of the block).
    B3 = 1100
    x3 = jax.random.normal(kx3, (B3, N_STATES), dtype=jnp.float32)
    actions_value3 = net_forward(x3, params_bf16)
    jax.block_until_ready(actions_value3)
    assert actions_value3.shape == (B3, N_ACTIONS)
    assert jnp.allclose(actions_value3, torch_ref(x3), atol=5e-2, rtol=5e-2)

    print("KERNEL_OK")
</pallas_src>

<mosaic_0001>
module attributes {stable_mosaic.version = 11 : i64} {
  func.func @net_kernel(%arg0: memref<2x4xf32, #tpu.memory_space<vmem>>, %arg1: memref<4x128xbf16, #tpu.memory_space<vmem>>, %arg2: memref<1x128xf32, #tpu.memory_space<vmem>>, %arg3: memref<128x128xbf16, #tpu.memory_space<vmem>>, %arg4: memref<1x128xf32, #tpu.memory_space<vmem>>, %arg5: memref<2x2xf32, #tpu.memory_space<vmem>>) attributes {dimension_semantics = [], scalar_prefetch = 0 : i64, scratch_operands = 0 : i64, tpu.core_type = #tpu.core_type<tc>} {
    %c0 = arith.constant 0 : index
    %c0_0 = arith.constant 0 : index
    %0 = vector.load %arg1[%c0, %c0_0] : memref<4x128xbf16, #tpu.memory_space<vmem>>, vector<4x128xbf16>
    %c0_1 = arith.constant 0 : index
    %c0_2 = arith.constant 0 : index
    %1 = vector.load %arg3[%c0_1, %c0_2] : memref<128x128xbf16, #tpu.memory_space<vmem>>, vector<128x128xbf16>
    %c0_3 = arith.constant 0 : index
    %c0_4 = arith.constant 0 : index
    %2 = vector.load %arg0[%c0_3, %c0_4] : memref<2x4xf32, #tpu.memory_space<vmem>>, vector<2x4xf32>
    %3 = arith.truncf %2 : vector<2x4xf32> to vector<2x4xbf16>
    %cst = arith.constant dense<0.000000e+00> : vector<2x128xf32>
    %4 = tpu.matmul %3, %0, %cst {dimension_numbers = #tpu.dot_dimension_numbers<[1], [0], [0], [1], [0, 0, 1, 1], [], []>} : vector<2x4xbf16>, vector<4x128xbf16>, vector<2x128xf32> -> vector<2x128xf32>
    %c0_5 = arith.constant 0 : index
    %c0_6 = arith.constant 0 : index
    %5 = vector.load %arg2[%c0_5, %c0_6] : memref<1x128xf32, #tpu.memory_space<vmem>>, vector<1x128xf32>
    %6 = vector.broadcast %5 : vector<1x128xf32> to vector<2x128xf32>
    %7 = arith.addf %4, %6 : vector<2x128xf32>
    %cst_7 = arith.constant 0.000000e+00 : f32
    %8 = vector.broadcast %cst_7 : f32 to vector<2x128xf32>
    %9 = arith.maximumf %7, %8 : vector<2x128xf32>
    %10 = arith.truncf %9 : vector<2x128xf32> to vector<2x128xbf16>
    %cst_8 = arith.constant dense<0.000000e+00> : vector<2x128xf32>
    %11 = tpu.matmul %10, %1, %cst_8 {dimension_numbers = #tpu.dot_dimension_numbers<[1], [0], [0], [1], [0, 0, 1, 1], [], []>} : vector<2x128xbf16>, vector<128x128xbf16>, vector<2x128xf32> -> vector<2x128xf32>
    %c0_9 = arith.constant 0 : index
    %c0_10 = arith.constant 0 : index
    %12 = vector.load %arg4[%c0_9, %c0_10] : memref<1x128xf32, #tpu.memory_space<vmem>>, vector<1x128xf32>
    %13 = vector.broadcast %12 : vector<1x128xf32> to vector<2x128xf32>
    %14 = arith.addf %11, %13 : vector<2x128xf32>
    %15 = vector.extract_strided_slice %14 {offsets = [0, 0], sizes = [2, 2], strides = [1, 1]} : vector<2x128xf32> to vector<2x2xf32>
    %c0_11 = arith.constant 0 : index
    %c0_12 = arith.constant 0 : index
    %16 = vector.load %arg5[%c0_11, %c0_12] : memref<2x2xf32, #tpu.memory_space<vmem>>, vector<2x2xf32>
    tpu.vector_store %arg5[%c0_11, %c0_12], %15 {strides = array<i32>} : memref<2x2xf32, #tpu.memory_space<vmem>>, vector<2x2xf32>,
    return
  }
}

</mosaic_0001>

<bundles_post_ra>
// kernel: net_forward.1
= control target key start
LH: loop header
LB: loop body
LE: loop exit
PB: predicated region body
PF: predicated region fallthrough
CT: control target
= control target key end

     0   :  { %10 = vsyncpa [#allocation3], 0  ;;  %s401_s0 = inlined_call_operand.hbm [shape: f32[2,4], index: 0, kind: input, shape index: {}]   ;;  %s402_s1 = inlined_call_operand.hbm [shape: bf16[4,128], index: 1, kind: input, shape index: {}]   ;;  %s403_s2 = inlined_call_operand.vmem [shape: f32[1,128], index: 2, kind: input, shape index: {}]   ;;  %s404_s3 = inlined_call_operand.hbm [shape: bf16[128,128], index: 3, kind: input, shape index: {}]   ;;  %s405_s4 = inlined_call_operand.vmem [shape: f32[1,128], index: 4, kind: input, shape index: {}]   ;;  %s406_s5 = inlined_call_operand.hbm [shape: f32[2,2], index: 5, kind: output, shape index: {}]  }
   0x1   :  { %11 = vsyncpa [#allocation6], 0  ;;  %s29_s20 = sshll.u32 %s402_s1, 4  ;;  %s30_s20 = int_to_ptr.hbm [resolvable:$true] %s29_s20 }
   0x2   :  { %12 = vsyncpa [#allocation4], 0  ;;  %s347_s21 = smov [#allocation5]   ;;  %s18_s25 = sshll.u32 %s401_s0, 4  ;;  %s19_s25 = int_to_ptr.hbm [resolvable:$true] %s18_s25 }
   0x3   :  { %s31_s22 = sshll.u32 %s347_s21, 4  ;;  %s348_s26 = smov [#allocation2]   ;;  %s32_s22 = int_to_ptr.vmem [resolvable:$true] %s31_s22 }
   0x4   :  { %34 = dma.hbm_to_vmem [thread:$0]  %s30_s20, 32, %s32_s22, [#allocation6]  }
   0x5   :  { %s20_s27 = sshll.u32 %s348_s26, 4  ;;  %s41_s30 = sshll.u32 %s404_s3, 4  ;;  %s21_s27 = int_to_ptr.vmem [resolvable:$true] %s20_s27  ;;  %s42_s30 = int_to_ptr.hbm [resolvable:$true] %s41_s30 }
   0x6   :  { %23 = dma.hbm_to_vmem [thread:$0]  %s19_s25, 32, %s21_s27, [#allocation3]  }
   0x7   :  { %s349_s1 = smov [#allocation7]   ;;  %s350_s7 = smov 64  }
   0x8   :  { %s43_s6 = sshll.u32 %s349_s1, 4  ;;  %s351_s8 = smov 4   ;;  %s44_s6 = int_to_ptr.vmem [resolvable:$true] %s43_s6 }
   0x9   :  { %49 = dma.hbm_to_vmem [thread:$0]  %s42_s30, 1024, %s44_s6, [#allocation6], %s350_s7, %s350_s7, %s351_s8  }
   0xa   :  { %341 = dma.done.wait [#allocation3], 32  }
   0xb   :  { %342 = vsyncadd [#allocation3], 4294967264 }
   0xc   :  { %343 = dma.done.wait [#allocation6], 1056  }
   0xd   :  { %344 = vsyncadd [#allocation6], 4294966240  ;;  %vm92_vm0 = vcmask 1041408   ;;  %v65_v0 = vld [vmem:[#allocation5] sm:$0x3]  ;;  %vm88_vm1 = vcmask 31744  }
   0xe   :  { %v82_v1 = vld [vmem:[#allocation2] sm:$0x3]  ;;  %v94_v3 = vsel %vm92_vm0, %v65_v0, 0  ;;  %v235_v5 = vld [vmem:[#allocation7 + $0x30] sm:$0xff]  ;;  %v234_v6 = vld [vmem:[#allocation7 + $0x28] sm:$0xff]  ;;  %s352_s11 = smov [#allocation8]  }
   0xf   :  { %v236_v2 = vld [vmem:[#allocation7 + $0x38] sm:$0xff]  ;;  %v83_v4 = vpack.c.bf16 %v82_v1, %v82_v1  ;;  %103 = vmatpush.bf16.msra.mxu0 %v94_v3  ;;  %v233_v7 = vld [vmem:[#allocation7 + $0x20] sm:$0xff]  ;;  %v231_v9 = vld [vmem:[#allocation7 + $0x10] sm:$0xff]  ;;  %s183_s12 = sshll.u32 %s352_s11, 4  ;;  %s185_s15 = sshll.u32 %s406_s5, 4  ;;  %vm176_vm2 = vcmask 9216   ;;  %s184_s12 = int_to_ptr.vmem [resolvable:$true] %s183_s12  ;;  %s186_s15 = int_to_ptr.hbm [resolvable:$true] %s185_s15 }
  0x10   :  { %163 = vmatpush.bf16.msra.mxu1 %v236_v2  ;;  %v232_v8 = vld [vmem:[#allocation7 + $0x18] sm:$0xff]  ;;  %v230_v10 = vld [vmem:[#allocation7 + $0x8] sm:$0xff]  ;;  %v229_v11 = vld [vmem:[#allocation7] sm:$0xff] }
  0x11   :  { %v243_v12 = vld [vmem:[%s403_s2] ss:$0 sm:$0xff] }
  0x12   :  { %196 = vmatmul.msk.bf16.vlgmr.msra.gmra.mxu0 %vm88_vm1, %v83_v4  ;;  %v244_v18 = vld [vmem:[%s405_s4] ss:$0 sm:$0xff] }
  0x14   :  { %164 = vmatpush.bf16.msra.mxu1 %v235_v5 }
  0x18   :  { %165 = vmatpush.bf16.msra.mxu1 %v234_v6 }
  0x1c   :  { %166 = vmatpush.bf16.msra.mxu1 %v233_v7 }
  0x20   :  { %167 = vmatpush.bf16.msra.mxu1 %v232_v8 }
  0x24   :  { %168 = vmatpush.bf16.msra.mxu1 %v231_v9 }
  0x28   :  { %169 = vmatpush.bf16.msra.mxu1 %v230_v10 }
  0x2c   :  { %170 = vmatpush.bf16.msra.mxu1 %v229_v11 }
  0x8f   :  { %v105_v13 = vpop.f32.mrf.mxu0 }
  0x90   :  { %v106_v14 = vadd.f32 %v243_v12, %v105_v13 }
  0x92   :  { %v109_v15 = vmax.f32 %v106_v14, 0.0 }
  0x94   :  { %v110_v16 = vpack.c.bf16 %v109_v15, %v109_v15 }
  0x96   :  { %171 = vmatmul.bf16.vlgmr.msra.gmra.mxu1 %v110_v16 }
  0x97   :  { %v107_v17 = vpop.f32.mrf.mxu0 }
 0x113   :  { %v172_v19 = vpop.f32.mrf.mxu1 }
 0x114   :  { %v173_v20 = vadd.f32 %v244_v18, %v172_v19 }
 0x116   :  { %177 = vst.msk [vmem:[#allocation8] sm:$0x3] %vm176_vm2, %v173_v20 }
 0x117   :  { %188 = dma.vmem_to_hbm [thread:$0]  %s184_s12, 32, %s186_s15, [#allocation4]  }
 0x11b   :  { %v174_v21 = vpop.f32.mrf.mxu1 }
 0x11c   :  { %345 = dma.done.wait [#allocation4], 32  }
 0x11d   :  { %346 = vsyncadd [#allocation4], 4294967264 }
 0x11e   :  { %193 = vsyncpa [#allocation3], 1 }
 0x11f   :  { %194 = vsyncpa [#allocation6], 1 }
 0x120   :  { %195 = vsyncpa [#allocation4], 1 }

</bundles_post_ra>
